<compile_context>
chip_gen: v6e
topology: v6e:2x2x1
jax: 0.10.0
libtpu: 0.0.40
codegen_flags: <defaults>
</compile_context>

<pallas_src>
from functools import partial

import jax
import jax.numpy as jnp
from jax import lax
from jax.experimental import pallas as pl
from jax.experimental.pallas import tpu as pltpu


def _se_kernel(x_ref, w1_ref, w2_ref, o_ref, *, channels_last):
    """One batch tile of SE: pool -> FC -> ReLU -> FC -> sigmoid -> scale.

    channels_last=False: x_ref/o_ref are (TB, C, HW)  (HW on the lane axis).
    channels_last=True : x_ref/o_ref are (TB, HW, C)  (C on the lane axis).
    w1_ref: (Cr, C), w2_ref: (C, Cr)   -- PyTorch nn.Linear.weight layouts.
    """
    xv = x_ref[...]
    if channels_last:
        hw = x_ref.shape[1]
        reduce_axis = 1
    else:
        hw = x_ref.shape[2]
        reduce_axis = 2

    # Squeeze: f32-accumulated global average pool (no f32 copy of x).
    pooled = jnp.sum(xv, axis=reduce_axis, dtype=jnp.float32) * (1.0 / hw)   # (TB, C)

    # Excitation, batched over the whole tile (fills MXU output columns with
    # TB rows instead of TB serial N=1 matmuls).  Weights stay in their
    # stored dtype; accumulation is f32.
    w1 = w1_ref[...]                                                          # (Cr, C)
    w2 = w2_ref[...]                                                          # (C, Cr)
    h = lax.dot_general(pooled.astype(w1.dtype), w1,
                        (((1,), (1,)), ((), ())),
                        preferred_element_type=jnp.float32)                   # (TB, Cr)
    h = jnp.maximum(h, 0.0)
    s = lax.dot_general(h.astype(w2.dtype), w2,
                        (((1,), (1,)), ((), ())),
                        preferred_element_type=jnp.float32)                   # (TB, C)
    s = jax.nn.sigmoid(s)                                                     # f32 gate

    # Scale: multiply in f32 (gate keeps full precision), cast the product.
    gate = s[:, None, :] if channels_last else s[:, :, None]
    o_ref[...] = (xv * gate).astype(o_ref.dtype)


def _device_params():
    """(TensorCores sharing the grid, VMEM budget for pipelined blocks)."""
    try:
        kind = jax.devices()[0].device_kind.lower()
    except Exception:
        kind = ""
    if "v7" in kind:
        return 2, 56 << 20      # 2 TCs/chip, 64 MiB VMEM per TC
    if "v5" in kind or "v6" in kind:
        return 1, 100 << 20     # single TC, 128 MiB VMEM
    return 1, 56 << 20          # conservative fallback


def _choose_batch_tile(b, per_image_bytes, weight_bytes, num_tc, vmem_budget,
                       target_bytes=8 << 20):
    """Pick a batch-tile size TB (a divisor of b)."""
    total = b * per_image_bytes
    # Tiny problem: one resident block beats any pipelining (the ~0.35us
    # per-grid-step overhead would dominate a sub-microsecond kernel).
    if 4 * total + weight_bytes <= min(vmem_budget, 24 << 20):
        return b
    # VMEM cap: 2x double-buffered input blocks + 2x output blocks + weights.
    max_tb_vmem = max(1, int((vmem_budget - weight_bytes) // max(4 * per_image_bytes, 1)))
    tb = max(1, min(b, int(target_bytes // max(per_image_bytes, 1)), max_tb_vmem))
    # Multi-TC chips (v7x): keep >= 2 grid steps per core so input DMA of the
    # next block overlaps writeback of the previous one.  Single-TC chips
    # (v5e/v6e) get the full block budget -- no artificial grid >= 2 cap.
    if num_tc > 1 and b >= 2 * num_tc:
        tb = min(tb, b // (2 * num_tc))
    tb = max(1, tb)
    while b % tb != 0:
        tb -= 1
    return tb


@jax.jit
def se_layer(x, w1, w2):
    """SELayer forward.

    x:  (B, C, H, W)  NCHW.
    w1: (C//r, C) = fc[0].weight   (PyTorch layout, bias-free)
    w2: (C, C//r) = fc[2].weight   (PyTorch layout, bias-free)
    """
    b, c, h, w = x.shape
    hw = h * w
    cr = w1.shape[0]

    # Lane-dense layout: for small feature maps put C on the lane axis so the
    # streaming stores are unmasked; otherwise keep NCHW (HW on lanes).
    channels_last = (hw < 128) and (c >= 128)
    if channels_last:
        x2 = jnp.transpose(x.reshape(b, c, hw), (0, 2, 1))        # (B, HW, C)
        block_shape = lambda tb: (tb, hw, c)
    else:
        x2 = x.reshape(b, c, hw)                                  # (B, C, HW)
        block_shape = lambda tb: (tb, c, hw)

    itemsize = x.dtype.itemsize
    w_bytes = w1.size * w1.dtype.itemsize + w2.size * w2.dtype.itemsize
    num_tc, vmem_budget = _device_params()
    tb = _choose_batch_tile(b, c * hw * itemsize, w_bytes, num_tc, vmem_budget)
    block_bytes = tb * c * hw * itemsize
    vmem_limit = int(min(max(4 * block_bytes + 2 * w_bytes + (2 << 20), 32 << 20),
                         vmem_budget + (8 << 20)))

    cost = pl.CostEstimate(
        flops=int(2 * b * c * hw + 4 * b * c * cr),
        transcendentals=int(b * c),
        bytes_accessed=int(2 * b * c * hw * itemsize + w_bytes),
    )

    out = pl.pallas_call(
        partial(_se_kernel, channels_last=channels_last),
        out_shape=jax.ShapeDtypeStruct(x2.shape, x.dtype),
        grid_spec=pltpu.PrefetchScalarGridSpec(
            num_scalar_prefetch=0,
            grid=(b // tb,),
            in_specs=[
                pl.BlockSpec(block_shape(tb), lambda i: (i, 0, 0)),
                pl.BlockSpec((cr, c), lambda i: (0, 0)),
                pl.BlockSpec((c, cr), lambda i: (0, 0)),
            ],
            out_specs=pl.BlockSpec(block_shape(tb), lambda i: (i, 0, 0)),
        ),
        compiler_params=pltpu.CompilerParams(
            dimension_semantics=("parallel",),
            vmem_limit_bytes=vmem_limit,
        ),
        cost_estimate=cost,
    )(x2, w1, w2)

    if channels_last:
        return jnp.transpose(out, (0, 2, 1)).reshape(b, c, h, w)
    return out.reshape(b, c, h, w)


def _reference(x, w1, w2):
    y = jnp.mean(x, axis=(2, 3))                      # (B, C)
    y = jnp.maximum(y @ w1.T, 0.0)                    # (B, Cr)
    y = jax.nn.sigmoid(y @ w2.T)                      # (B, C)
    return x * y[:, :, None, None]


if __name__ == "__main__":
    key = jax.random.PRNGKey(0)

    # --- main demo: NCHW layout path (HW on lanes) -------------------------
    B, C, H, W = 2, 32, 16, 16
    REDUCTION = 16
    CR = C // REDUCTION   # 2
    kx, k1, k2, kx2, k3, k4 = jax.random.split(key, 6)

    x = jax.random.normal(kx, (B, C, H, W), dtype=jnp.float32)
    # PyTorch Linear weight layouts: (out_features, in_features), bias-free.
    w1 = jax.random.normal(k1, (CR, C), dtype=jnp.float32) * 0.1   # nn.Linear(C, C//r).weight
    w2 = jax.random.normal(k2, (C, CR), dtype=jnp.float32) * 0.1   # nn.Linear(C//r, C).weight

    out = se_layer(x, w1, w2)
    jax.block_until_ready(out)
    ref = _reference(x, w1, w2)
    assert out.shape == (B, C, H, W)
    assert jnp.allclose(out, ref, atol=1e-5, rtol=1e-5)

    # --- small-feature-map stage: channels-last (lane-dense) path ----------
    B2, C2, H2, W2 = 2, 128, 7, 7
    CR2 = C2 // REDUCTION  # 8
    xb = jax.random.normal(kx2, (B2, C2, H2, W2), dtype=jnp.float32)
    w1b = jax.random.normal(k3, (CR2, C2), dtype=jnp.float32) * 0.1
    w2b = jax.random.normal(k4, (C2, CR2), dtype=jnp.float32) * 0.1

    outb = se_layer(xb, w1b, w2b)
    jax.block_until_ready(outb)
    refb = _reference(xb, w1b, w2b)
    assert outb.shape == (B2, C2, H2, W2)
    assert jnp.allclose(outb, refb, atol=1e-5, rtol=1e-5)

    print("KERNEL_OK")
</pallas_src>

<mosaic_0001>
module attributes {stable_mosaic.version = 11 : i64} {
  func.func @_se_kernel(%arg0: i32, %arg1: memref<2x32x256xf32, #tpu.memory_space<vmem>>, %arg2: memref<2x32xf32, #tpu.memory_space<vmem>>, %arg3: memref<32x2xf32, #tpu.memory_space<vmem>>, %arg4: memref<2x32x256xf32, #tpu.memory_space<vmem>>) attributes {dimension_semantics = [#tpu.dimension_semantics<parallel>], iteration_bounds = array<i64: 1>, scalar_prefetch = 0 : i64, scratch_operands = 0 : i64, tpu.core_type = #tpu.core_type<tc>, window_params = [{transform_indices = @transform_0, window_bounds = array<i64: 2, 32, 256>}, {pipeline_mode = #tpu.pipeline_mode<synchronous>, transform_indices = @transform_1, window_bounds = array<i64: 2, 32>}, {pipeline_mode = #tpu.pipeline_mode<synchronous>, transform_indices = @transform_2, window_bounds = array<i64: 32, 2>}, {transform_indices = @transform_3, window_bounds = array<i64: 2, 32, 256>}]} {
    %c0 = arith.constant 0 : index
    %c0_0 = arith.constant 0 : index
    %c0_1 = arith.constant 0 : index
    %0 = vector.load %arg1[%c0, %c0_0, %c0_1] : memref<2x32x256xf32, #tpu.memory_space<vmem>>, vector<2x32x256xf32>
    %cst = arith.constant dense<0.000000e+00> : vector<2x32xf32>
    %1 = vector.multi_reduction <add>, %0, %cst [2] : vector<2x32x256xf32> to vector<2x32xf32>
    %cst_2 = arith.constant 3.906250e-03 : f32
    %2 = vector.broadcast %cst_2 : f32 to vector<2x32xf32>
    %3 = arith.mulf %1, %2 : vector<2x32xf32>
    %c0_3 = arith.constant 0 : index
    %c0_4 = arith.constant 0 : index
    %4 = vector.load %arg2[%c0_3, %c0_4] : memref<2x32xf32, #tpu.memory_space<vmem>>, vector<2x32xf32>
    %c0_5 = arith.constant 0 : index
    %c0_6 = arith.constant 0 : index
    %5 = vector.load %arg3[%c0_5, %c0_6] : memref<32x2xf32, #tpu.memory_space<vmem>>, vector<32x2xf32>
    %cst_7 = arith.constant dense<0.000000e+00> : vector<2x2xf32>
    %6 = tpu.matmul %3, %4, %cst_7 {dimension_numbers = #tpu.dot_dimension_numbers<[1], [1], [0], [0], [0, 0, 1, 0], [], []>} : vector<2x32xf32>, vector<2x32xf32>, vector<2x2xf32> -> vector<2x2xf32>
    %cst_8 = arith.constant 0.000000e+00 : f32
    %7 = vector.broadcast %cst_8 : f32 to vector<2x2xf32>
    %8 = arith.maximumf %6, %7 : vector<2x2xf32>
    %cst_9 = arith.constant dense<0.000000e+00> : vector<2x32xf32>
    %9 = tpu.matmul %8, %5, %cst_9 {dimension_numbers = #tpu.dot_dimension_numbers<[1], [1], [0], [0], [0, 0, 1, 0], [], []>} : vector<2x2xf32>, vector<32x2xf32>, vector<2x32xf32> -> vector<2x32xf32>
    %10 = arith.negf %9 : vector<2x32xf32>
    %11 = math.exp %10 : vector<2x32xf32>
    %cst_10 = arith.constant 1.000000e+00 : f32
    %12 = vector.broadcast %cst_10 : f32 to vector<2x32xf32>
    %13 = arith.addf %12, %11 : vector<2x32xf32>
    %14 = arith.divf %12, %13 : vector<2x32xf32>
    %15 = vector.shape_cast %14 : vector<2x32xf32> to vector<2x32x1xf32>
    %16 = vector.broadcast %15 : vector<2x32x1xf32> to vector<2x32x256xf32>
    %17 = arith.mulf %0, %16 : vector<2x32x256xf32>
    %c0_11 = arith.constant 0 : index
    %c0_12 = arith.constant 0 : index
    %c0_13 = arith.constant 0 : index
    %18 = vector.load %arg4[%c0_11, %c0_12, %c0_13] : memref<2x32x256xf32, #tpu.memory_space<vmem>>, vector<2x32x256xf32>
    tpu.vector_store %arg4[%c0_11, %c0_12, %c0_13], %17 {strides = array<i32>} : memref<2x32x256xf32, #tpu.memory_space<vmem>>, vector<2x32x256xf32>,
    return
  }
  func.func @transform_0(%arg0: i32) -> (i32, i32, i32) {
    %c0_i32 = arith.constant 0 : i32
    %c0_i32_0 = arith.constant 0 : i32
    %c0_i32_1 = arith.constant 0 : i32
    return %arg0, %c0_i32, %c0_i32_0 : i32, i32, i32
  }
  func.func @transform_1(%arg0: i32) -> (i32, i32) {
    %c0_i32 = arith.constant 0 : i32
    %c0_i32_0 = arith.constant 0 : i32
    %c0_i32_1 = arith.constant 0 : i32
    return %c0_i32, %c0_i32_0 : i32, i32
  }
  func.func @transform_2(%arg0: i32) -> (i32, i32) {
    %c0_i32 = arith.constant 0 : i32
    %c0_i32_0 = arith.constant 0 : i32
    %c0_i32_1 = arith.constant 0 : i32
    return %c0_i32, %c0_i32_0 : i32, i32
  }
  func.func @transform_3(%arg0: i32) -> (i32, i32, i32) {
    %c0_i32 = arith.constant 0 : i32
    %c0_i32_0 = arith.constant 0 : i32
    %c0_i32_1 = arith.constant 0 : i32
    return %arg0, %c0_i32, %c0_i32_0 : i32, i32, i32
  }
}

</mosaic_0001>

<bundles_post_ra>
// kernel: se_layer.1
= control target key start
LH: loop header
LB: loop body
LE: loop exit
PB: predicated region body
PF: predicated region fallthrough
CT: control target
= control target key end

     0   :  { %v403_v24 = vmov 0.0   ;;  %vm123_vm0 = vcmask 261120   ;;  %vm404_vm1 = vmmov 0   ;;  %vm200_vm2 = vcmask 15360   ;;  %s607_s0 = inlined_call_operand.vmem [shape: f32[2,32,256], index: 0, kind: input, shape index: {}]   ;;  %s608_s1 = inlined_call_operand.vmem [shape: f32[2,32], index: 1, kind: input, shape index: {}]   ;;  %s609_s2 = inlined_call_operand.vmem [shape: f32[32,2], index: 2, kind: input, shape index: {}]   ;;  %s610_s3 = inlined_call_operand.vmem [shape: f32[2,32,256], index: 3, kind: output, shape index: {}]  }
   0x1   :  { %v428_v0 = vld [vmem:[%s607_s0 + $0x40] sm:$0xff]  ;;  %v433_v1 = vld [vmem:[%s607_s0 + $0x48] sm:$0xff]  ;;  %v450_v5 = vld [vmem:[%s607_s0 + $0x50] sm:$0xff]  ;;  %381 = vmatprep.subr.mxu0 %v403_v24  ;;  %386 = vmatprep.subr.mxu1 %v403_v24  ;;  %v75_v29 = vlaneseq  ;;  %vm86_vm3 = vcmask 130112   ;;  %vm93_vm4 = vcmask 195712   ;;  %vm100_vm5 = vcmask 261312  }
   0x2   :  { %v438_v2 = vld [vmem:[%s607_s0] sm:$0xff]  ;;  %v42_v3 = vadd.f32 %v433_v1, %v428_v0  ;;  %v445_v4 = vld [vmem:[%s607_s0 + $0x8] sm:$0xff]  ;;  %v455_v6 = vld [vmem:[%s607_s0 + $0x58] sm:$0xff]  ;;  %383 = vmatprep.mubr.msk.f32.mxu0 %vm404_vm1, %v403_v24  ;;  %394 = vmatprep.mubr.msk.f32.mxu1 %vm404_vm1, %v403_v24  ;;  %vm121_vm6 = vcmask 1041409  }
   0x3   :  { %v30_v7 = vadd.f32 %v445_v4, %v438_v2  ;;  %v462_v8 = vld [vmem:[%s607_s0 + $0x10] sm:$0xff]  ;;  %v467_v9 = vld [vmem:[%s607_s0 + $0x18] sm:$0xff]  ;;  %v45_v10 = vadd.f32 %v455_v6, %v450_v5  ;;  %v476_v12 = vld [vmem:[%s607_s0 + $0x60] sm:$0xff]  ;;  %v76_v31 = vand.u32 127, %v75_v29  ;;  %v78_v36 = vshrl.u32 %v75_v29, 7 }
   0x4   :  { %43 = vadd.xlane.f32.xlu1 %v42_v3  ;;  %v33_v11 = vadd.f32 %v467_v9, %v462_v8  ;;  %v481_v13 = vld [vmem:[%s607_s0 + $0x68] sm:$0xff]  ;;  %v486_v14 = vld [vmem:[%s607_s0 + $0x20] sm:$0xff]  ;;  %v500_v18 = vld [vmem:[%s607_s0 + $0x70] sm:$0xff] }
   0x5   :  { %31 = vadd.xlane.f32.xlu0 %v30_v7  ;;  %v491_v15 = vld [vmem:[%s607_s0 + $0x28] sm:$0xff]  ;;  %v48_v16 = vadd.f32 %v481_v13, %v476_v12  ;;  %v505_v19 = vld [vmem:[%s607_s0 + $0x78] sm:$0xff]  ;;  %v510_v20 = vld [vmem:[%s607_s0 + $0x30] sm:$0xff]  ;;  %v81_v33 = vadd.s32 4294967288, %v76_v31  ;;  %v88_v35 = vadd.s32 4294967280, %v76_v31  ;;  %v95_v40 = vadd.s32 4294967272, %v76_v31 }
   0x6   :  { %v36_v17 = vadd.f32 %v491_v15, %v486_v14  ;;  %v515_v21 = vld [vmem:[%s607_s0 + $0x38] sm:$0xff]  ;;  %v51_v22 = vadd.f32 %v505_v19, %v500_v18  ;;  %v62_v25 = vld [vmem:[%s608_s1] sm:$0x3]  ;;  %v65_v27 = vld [vmem:[%s609_s2 + $0x10] sm:$0xff]  ;;  %v79_v44 = vsub.s32 %v76_v31, %v78_v36  ;;  %v294_v31 = vsub.s32 0, %v78_v36 }
   0x7   :  { %v39_v23 = vadd.f32 %v515_v21, %v510_v20  ;;  %382 = vmatpush3.xpose.msk.msra.mxu0 %vm123_vm0, %v62_v25  ;;  %v66_v26 = vld [vmem:[%s609_s2 + $0x18] sm:$0xff]  ;;  %v64_v28 = vld [vmem:[%s609_s2 + $0x8] sm:$0xff]  ;;  %v84_v38 = vsub.s32 %v81_v33, %v78_v36  ;;  %v91_v42 = vsub.s32 %v88_v35, %v78_v36  ;;  %v98_v51 = vsub.s32 %v95_v40, %v78_v36 }
   0x8   :  { %46 = vadd.xlane.f32.xlu1 %v45_v10  ;;  %387 = vmatpush3.xpose.msk.msra.mxu1 %vm200_vm2, %v66_v26 }
   0x9   :  { %34 = vadd.xlane.f32.xlu0 %v33_v11  ;;  %388 = vmatprep.subr.mxu1 %v403_v24 }
   0xc   :  { %49 = vadd.xlane.f32.xlu1 %v48_v16  ;;  %389 = vmatpush3.xpose.msk.msra.mxu1 %vm200_vm2, %v65_v27 }
   0xd   :  { %37 = vadd.xlane.f32.xlu0 %v36_v17  ;;  %390 = vmatprep.subr.mxu1 %v403_v24 }
  0x10   :  { %52 = vadd.xlane.f32.xlu1 %v51_v22  ;;  %391 = vmatpush3.xpose.msk.msra.mxu1 %vm200_vm2, %v64_v28  ;;  %v63_v22 = vld [vmem:[%s609_s2] sm:$0xff] }
  0x11   :  { %40 = vadd.xlane.f32.xlu0 %v39_v23  ;;  %392 = vmatprep.subr.mxu1 %v403_v24 }
  0x14   :  { %393 = vmatpush3.xpose.msk.msra.mxu1 %vm200_vm2, %v63_v22 }
  0x8d   :  { %v44_v30 = vpop.xlane.xlu1 %43 }
  0x8e   :  { %v32_v32 = vpop.xlane.xlu0 %31  ;;  %v58_v45 = vmul.f32 0.00390625, %v44_v30 }
  0x8f   :  { %v54_v48 = vmul.f32 0.00390625, %v32_v32 }
  0x90   :  { %v105_v55 = vrot.slane %v58_v45, %v79_v44 }
  0x91   :  { %v47_v34 = vpop.xlane.xlu1 %46  ;;  %v80_v59 = vrot.slane %v54_v48, %v79_v44 }
  0x92   :  { %v35_v37 = vpop.xlane.xlu0 %34  ;;  %v59_v39 = vmul.f32 0.00390625, %v47_v34  ;;  %v313_v34 = vsub.s32 1, %v78_v36 }
  0x93   :  { %v55_v41 = vmul.f32 0.00390625, %v35_v37 }
  0x94   :  { %v109_v50 = vrot.slane %v59_v39, %v84_v38 }
  0x95   :  { %v50_v43 = vpop.xlane.xlu1 %49  ;;  %v85_v52 = vrot.slane %v55_v41, %v84_v38 }
  0x96   :  { %v60_v46 = vmul.f32 0.00390625, %v50_v43  ;;  %v38_v47 = vpop.xlane.xlu0 %37  ;;  %v110_v61 = vsel %vm86_vm3, %v109_v50, %v105_v55 }
  0x97   :  { %v56_v49 = vmul.f32 0.00390625, %v38_v47  ;;  %v87_v63 = vsel %vm86_vm3, %v85_v52, %v80_v59 }
  0x98   :  { %v114_v53 = vrot.slane %v60_v46, %v91_v42 }
  0x99   :  { %v53_v54 = vpop.xlane.xlu1 %52  ;;  %v92_v56 = vrot.slane %v56_v49, %v91_v42 }
  0x9a   :  { %v61_v57 = vmul.f32 0.00390625, %v53_v54  ;;  %v41_v58 = vpop.xlane.xlu0 %40  ;;  %v115_v3 = vsel %vm93_vm4, %v114_v53, %v110_v61 }
  0x9b   :  { %v57_v60 = vmul.f32 0.00390625, %v41_v58  ;;  %v94_v10 = vsel %vm93_vm4, %v92_v56, %v87_v63 }
  0x9c   :  { %v119_v62 = vrot.slane %v61_v57, %v98_v51 }
  0x9d   :  { %v99_v7 = vrot.slane %v57_v60, %v98_v51 }
  0x9e   :  { %v120_v11 = vsel %vm100_vm5, %v119_v62, %v115_v3 }
  0x9f   :  { %v101_v16 = vsel %vm100_vm5, %v99_v7, %v94_v10 }
  0xa0   :  { %v122_v17 = vsel %vm121_vm6, %v120_v11, %v101_v16 }
  0xa1   :  { %384 = vmatmul.mubr.msk.f32.vlgmr.msra.gmra.mxu0 %vm123_vm0, %v122_v17 }
 0x161   :  { %v195_v23 = vpop.f32.mrf.mxu0 }
 0x162   :  { %v199_v24 = vmax.f32 %v195_v23, 0.0 }
 0x163   :  { %v385_v25 = vpop.f32.mrf.mxu0 }
 0x164   :  { %395 = vmatmul.mubr.msk.f32.vlgmr.msra.gmra.mxu1 %vm200_vm2, %v199_v24 }
 0x224   :  { %v282_v26 = vpop.f32.mrf.mxu1 }
 0x225   :  { %v373_v27 = vmul.f32 -1.442695, %v282_v26 }
 0x226   :  { %v396_v28 = vpop.f32.mrf.mxu1 }
 0x227   :  { %399 = vpow2.f32 %v373_v27 }
 0x234   :  { %v400_v29 = vpop.eup %399 }
 0x235   :  { %v289_v30 = vadd.f32 1.0, %v400_v29 }
 0x237   :  { %401 = vrcp.f32 %v289_v30 }
 0x244   :  { %v402_v32 = vpop.eup %401 }
 0x245   :  { %v295_v33 = vrot.slane %v402_v32, %v294_v31  ;;  %v314_v35 = vrot.slane %v402_v32, %v313_v34 }
 0x247   :  { %301 = vbcast.lane.b32.xlu1 %v295_v33, 264  ;;  %297 = vbcast.lane.b32.xlu0 %v295_v33, 256 }
 0x24b   :  { %305 = vbcast.lane.b32.xlu1 %v295_v33, 272  ;;  %316 = vbcast.lane.b32.xlu0 %v314_v35, 256 }
 0x24f   :  { %309 = vbcast.lane.b32.xlu1 %v295_v33, 280  ;;  %324 = vbcast.lane.b32.xlu0 %v314_v35, 272 }
 0x253   :  { %320 = vbcast.lane.b32.xlu1 %v314_v35, 264 }
 0x257   :  { %328 = vbcast.lane.b32.xlu1 %v314_v35, 280 }
 0x2b9   :  { %v302_v37 = vpop.permute.xlu1 %301  ;;  %v298_v38 = vpop.permute.xlu0 %297 }
 0x2ba   :  { %v332_v39 = vmul.f32 %v302_v37, %v462_v8  ;;  %v333_v40 = vmul.f32 %v302_v37, %v467_v9  ;;  %v330_v41 = vmul.f32 %v298_v38, %v438_v2  ;;  %v331_v42 = vmul.f32 %v298_v38, %v445_v4 }
 0x2bc   :  { %348 = vst [vmem:[%s610_s3 + $0x10] sm:$0xff] %v332_v39  ;;  %349 = vst [vmem:[%s610_s3 + $0x18] sm:$0xff] %v333_v40 }
 0x2bd   :  { %346 = vst [vmem:[%s610_s3] sm:$0xff] %v330_v41  ;;  %347 = vst [vmem:[%s610_s3 + $0x8] sm:$0xff] %v331_v42  ;;  %v306_v8 = vpop.permute.xlu1 %305  ;;  %v317_v2 = vpop.permute.xlu0 %316 }
 0x2be   :  { %v334_v4 = vmul.f32 %v306_v8, %v486_v14  ;;  %v335_v9 = vmul.f32 %v306_v8, %v491_v15  ;;  %v338_v36 = vmul.f32 %v317_v2, %v428_v0  ;;  %v339_v43 = vmul.f32 %v317_v2, %v433_v1 }
 0x2c0   :  { %350 = vst [vmem:[%s610_s3 + $0x20] sm:$0xff] %v334_v4  ;;  %351 = vst [vmem:[%s610_s3 + $0x28] sm:$0xff] %v335_v9 }
 0x2c1   :  { %354 = vst [vmem:[%s610_s3 + $0x40] sm:$0xff] %v338_v36  ;;  %355 = vst [vmem:[%s610_s3 + $0x48] sm:$0xff] %v339_v43  ;;  %v310_v14 = vpop.permute.xlu1 %309  ;;  %v325_v0 = vpop.permute.xlu0 %324 }
 0x2c2   :  { %v336_v1 = vmul.f32 %v310_v14, %v510_v20  ;;  %v337_v15 = vmul.f32 %v310_v14, %v515_v21  ;;  %v342_v44 = vmul.f32 %v325_v0, %v476_v12  ;;  %v343_v45 = vmul.f32 %v325_v0, %v481_v13 }
 0x2c4   :  { %352 = vst [vmem:[%s610_s3 + $0x30] sm:$0xff] %v336_v1  ;;  %353 = vst [vmem:[%s610_s3 + $0x38] sm:$0xff] %v337_v15 }
 0x2c5   :  { %358 = vst [vmem:[%s610_s3 + $0x60] sm:$0xff] %v342_v44  ;;  %359 = vst [vmem:[%s610_s3 + $0x68] sm:$0xff] %v343_v45  ;;  %v321_v20 = vpop.permute.xlu1 %320 }
 0x2c6   :  { %v340_v12 = vmul.f32 %v321_v20, %v450_v5  ;;  %v341_v13 = vmul.f32 %v321_v20, %v455_v6 }
 0x2c8   :  { %356 = vst [vmem:[%s610_s3 + $0x50] sm:$0xff] %v340_v12  ;;  %357 = vst [vmem:[%s610_s3 + $0x58] sm:$0xff] %v341_v13 }
 0x2c9   :  { %v329_v21 = vpop.permute.xlu1 %328 }
 0x2ca   :  { %v344_v46 = vmul.f32 %v329_v21, %v500_v18  ;;  %v345_v47 = vmul.f32 %v329_v21, %v505_v19 }
 0x2cc   :  { %360 = vst [vmem:[%s610_s3 + $0x70] sm:$0xff] %v344_v46  ;;  %361 = vst [vmem:[%s610_s3 + $0x78] sm:$0xff] %v345_v47 }

</bundles_post_ra>
